<compile_context>
chip_gen: v5e
topology: v5e:2x2
jax: 0.10.0
libtpu: 0.0.40
codegen_flags: <defaults>
</compile_context>

<pallas_src>
import functools

import jax
import jax.numpy as jnp
from jax import lax
from jax.experimental import pallas as pl
from jax.experimental.pallas import tpu as pltpu


def _quadratic_mlp_kernel(h1, D, x_ref, w1_ref, b1_ref, w2_ref, b2_ref,
                          w3_ref, b3_ref, o_ref):
    cd = w2_ref.dtype  # compute dtype (bf16 or f32); operands pre-cast in wrapper

    # Fused layer-1 + quadratic + identity matmul, batch on lanes:
    #   (h1+2D, D) @ (TB, D)^T -> (h1+2D, TB)
    fused = lax.dot_general(
        w1_ref[...], x_ref[...],
        dimension_numbers=(((1,), (1,)), ((), ())),
        preferred_element_type=jnp.float32)

    h = jnp.maximum(fused[:h1] + b1_ref[...], 0.0)          # (h1, TB)
    xq = fused[h1:h1 + D]                                   # (D, TB) = sym(Q) @ x^T
    xt = fused[h1 + D:]                                     # (D, TB) = x^T (exact)

    # Layer 2: (h2, h1) @ (h1, TB) -> (h2, TB)
    h = jnp.maximum(
        jnp.dot(w2_ref[...], h.astype(cd),
                preferred_element_type=jnp.float32) + b2_ref[...], 0.0)

    # Final layer (1, h2) @ (h2, TB), plus quadratic term (sublane reduce).
    y = jnp.dot(w3_ref[...], h.astype(cd),
                preferred_element_type=jnp.float32)          # (1, TB)
    quad = jnp.sum(xq * xt, axis=0, keepdims=True)           # (1, TB)

    o_ref[...] = (y + quad + b3_ref[...]).astype(o_ref.dtype)  # lane-dense store


def _round_up(n, m):
    return -(-n // m) * m


def _choose_tile(batch, tile_b):
    """Batch-tile size: large (amortize grid-step overhead), lane-aligned
    (multiple of 128) when tiling, split >=2 ways for the two v7x TCs when one
    tile would cover a big batch."""
    tile_b = max(1, int(tile_b))
    if tile_b >= batch:
        if batch > 2048:  # single huge tile -> split so both TensorCores work
            return min(batch, _round_up(-(-batch // 2), 128))
        return batch      # block == full array dims (any size is legal)
    return max(128, (tile_b // 128) * 128)


def quadratic_mlp_forward(x, params, *, tile_b=16384, use_bf16=True):
    """x: (B, D) float32. params: weights in (fan_in, fan_out) layout for x @ W.

    tile_b: batch tile (sweep 8K-32K; keep <=16K on v7x's 64 MiB VMEM,
    up to 32K on v5e/v6e)."""
    B, D = x.shape
    h1 = params["w1"].shape[1]
    h2 = params["w2"].shape[1]
    compute_dtype = jnp.bfloat16 if use_bf16 else jnp.float32

    # ---- one-time wrapper-side prep (pure JAX, outside the kernel) -----------
    q_sym = 0.5 * (params["Q"] + params["Q"].T)                          # (D, D)
    # [W1^T ; sym(Q) ; I_D]: one MXU push emits layer-1 pre-acts, sym(Q) x^T,
    # and x^T (avoids an in-kernel transpose for the quadratic product).
    w1_aug_t = jnp.concatenate(
        [params["w1"].T, q_sym, jnp.eye(D, dtype=jnp.float32)], axis=0)  # (h1+2D, D)
    w2_t = params["w2"].T                                                 # (h2, h1)
    w3_row = params["w3"].T                                               # (1, h2)
    w1_aug_t = w1_aug_t.astype(compute_dtype)
    w2_t = w2_t.astype(compute_dtype)
    w3_row = w3_row.astype(compute_dtype)
    b1 = params["b1"].reshape(h1, 1).astype(jnp.float32)                  # lane-broadcast
    b2 = params["b2"].reshape(h2, 1).astype(jnp.float32)
    b3 = params["b3"].reshape(1, 1).astype(jnp.float32)

    # bf16 x halves HBM traffic (no-op if the caller already feeds bf16).
    x_in = x.astype(compute_dtype)

    # ---- batch tiling: 1-D "parallel" grid, weights stay VMEM-resident -------
    tb = _choose_tile(B, tile_b)
    grid = pl.cdiv(B, tb)

    kernel = functools.partial(_quadratic_mlp_kernel, h1, D)
    out = pl.pallas_call(
        kernel,
        grid=(grid,),
        in_specs=[
            pl.BlockSpec((tb, D), lambda i: (i, 0)),            # x tile (ragged ok)
            pl.BlockSpec(w1_aug_t.shape, lambda i: (0, 0)),
            pl.BlockSpec(b1.shape, lambda i: (0, 0)),
            pl.BlockSpec(w2_t.shape, lambda i: (0, 0)),
            pl.BlockSpec(b2.shape, lambda i: (0, 0)),
            pl.BlockSpec(w3_row.shape, lambda i: (0, 0)),
            pl.BlockSpec(b3.shape, lambda i: (0, 0)),
        ],
        out_specs=pl.BlockSpec((1, tb), lambda i: (0, i)),      # batch on lanes
        out_shape=jax.ShapeDtypeStruct((1, B), jnp.float32),
        compiler_params=pltpu.CompilerParams(
            dimension_semantics=("parallel",),
            vmem_limit_bytes=48 * 1024 * 1024),
    )(x_in, w1_aug_t, b1, w2_t, b2, w3_row, b3)

    return out.reshape(B, 1)


def init_params(key, in_dim, hidden_layers, gain=1.0):
    """Orthogonal init (QR); weights stored as (fan_in, fan_out) for x @ W."""
    def orthogonal(k, fan_in, fan_out):
        n, m = max(fan_in, fan_out), min(fan_in, fan_out)
        a = jax.random.normal(k, (n, m), dtype=jnp.float32)
        q, _ = jnp.linalg.qr(a)                        # (n, m), orthonormal columns
        w = q if fan_in >= fan_out else q.T            # (fan_in, fan_out)
        return (gain * w).astype(jnp.float32)

    dims = (in_dim,) + tuple(hidden_layers) + (1,)
    keys = jax.random.split(key, len(dims) - 1)
    params = {}
    for i, (din, dout) in enumerate(zip(dims[:-1], dims[1:]), start=1):
        params[f"w{i}"] = orthogonal(keys[i - 1], din, dout)        # (in, out)
        params[f"b{i}"] = jnp.zeros((1, dout), dtype=jnp.float32)
    params["Q"] = jnp.eye(in_dim, dtype=jnp.float32) + 0.1 * jnp.ones(
        (in_dim, in_dim), dtype=jnp.float32)
    return params


def reference_forward(x, params):
    """Pure-JAX reference of the PyTorch forward."""
    q_sym = 0.5 * (params["Q"] + params["Q"].T)
    quad = jnp.sum((x @ q_sym) * x, axis=-1, keepdims=True)
    h = jnp.maximum(x @ params["w1"] + params["b1"], 0.0)
    h = jnp.maximum(h @ params["w2"] + params["b2"], 0.0)
    y = h @ params["w3"] + params["b3"]
    return y + quad


if __name__ == "__main__":
    in_dim = 16
    hidden_layers = (32, 32)
    batch = 8

    key = jax.random.PRNGKey(0)
    kx, kp, kb = jax.random.split(key, 3)
    x = jax.random.normal(kx, (batch, in_dim), dtype=jnp.float32)
    params = init_params(kp, in_dim, hidden_layers, gain=1.0)
    ref = reference_forward(x, params)

    # 1) f32 MXU path: tight semantic check.
    out_f32 = jax.block_until_ready(
        quadratic_mlp_forward(x, params, use_bf16=False))
    assert out_f32.shape == (batch, 1), out_f32.shape
    assert jnp.allclose(out_f32, ref, atol=2e-4, rtol=2e-4), (out_f32, ref)

    # 2) Default bf16 path (half the HBM bytes): relaxed tolerance — bf16
    #    operands give ~1e-2-scale relative error vs the f32 reference.
    out_bf16 = jax.block_until_ready(quadratic_mlp_forward(x, params))
    assert out_bf16.shape == (batch, 1), out_bf16.shape
    assert jnp.allclose(out_bf16, ref, atol=1e-1, rtol=3e-2), (out_bf16, ref)

    # 3) Multi-tile + ragged last block path (grid > 1, partial reads/writes).
    xb = jax.random.normal(kb, (300, in_dim), dtype=jnp.float32)
    refb = reference_forward(xb, params)
    outb = jax.block_until_ready(
        quadratic_mlp_forward(xb, params, tile_b=128, use_bf16=False))
    assert outb.shape == (300, 1), outb.shape
    assert jnp.allclose(outb, refb, atol=2e-4, rtol=2e-4), (outb, refb)

    print("KERNEL_OK")
</pallas_src>

<mosaic_0001>
module attributes {stable_mosaic.version = 11 : i64} {
  func.func @_quadratic_mlp_kernel(%arg0: i32, %arg1: memref<8x16xf32, #tpu.memory_space<vmem>>, %arg2: memref<64x16xf32, #tpu.memory_space<vmem>>, %arg3: memref<32x1xf32, #tpu.memory_space<vmem>>, %arg4: memref<32x32xf32, #tpu.memory_space<vmem>>, %arg5: memref<32x1xf32, #tpu.memory_space<vmem>>, %arg6: memref<1x32xf32, #tpu.memory_space<vmem>>, %arg7: memref<1x1xf32, #tpu.memory_space<vmem>>, %arg8: memref<1x8xf32, #tpu.memory_space<vmem>>) attributes {dimension_semantics = [#tpu.dimension_semantics<parallel>], iteration_bounds = array<i64: 1>, scalar_prefetch = 0 : i64, scratch_operands = 0 : i64, tpu.core_type = #tpu.core_type<tc>, window_params = [{transform_indices = @transform_0, window_bounds = array<i64: 8, 16>}, {pipeline_mode = #tpu.pipeline_mode<synchronous>, transform_indices = @transform_1, window_bounds = array<i64: 64, 16>}, {pipeline_mode = #tpu.pipeline_mode<synchronous>, transform_indices = @transform_2, window_bounds = array<i64: 32, 1>}, {pipeline_mode = #tpu.pipeline_mode<synchronous>, transform_indices = @transform_3, window_bounds = array<i64: 32, 32>}, {pipeline_mode = #tpu.pipeline_mode<synchronous>, transform_indices = @transform_4, window_bounds = array<i64: 32, 1>}, {pipeline_mode = #tpu.pipeline_mode<synchronous>, transform_indices = @transform_5, window_bounds = array<i64: 1, 32>}, {pipeline_mode = #tpu.pipeline_mode<synchronous>, transform_indices = @transform_6, window_bounds = array<i64: 1, 1>}, {transform_indices = @transform_7, window_bounds = array<i64: 1, 8>}]} {
    %c0 = arith.constant 0 : index
    %c0_0 = arith.constant 0 : index
    %0 = vector.load %arg2[%c0, %c0_0] : memref<64x16xf32, #tpu.memory_space<vmem>>, vector<64x16xf32>
    %c0_1 = arith.constant 0 : index
    %c0_2 = arith.constant 0 : index
    %1 = vector.load %arg1[%c0_1, %c0_2] : memref<8x16xf32, #tpu.memory_space<vmem>>, vector<8x16xf32>
    %cst = arith.constant dense<0.000000e+00> : vector<64x8xf32>
    %2 = tpu.matmul %0, %1, %cst {dimension_numbers = #tpu.dot_dimension_numbers<[1], [1], [0], [0], [0, 0, 1, 0], [], []>} : vector<64x16xf32>, vector<8x16xf32>, vector<64x8xf32> -> vector<64x8xf32>
    %3 = vector.extract_strided_slice %2 {offsets = [0, 0], sizes = [32, 8], strides = [1, 1]} : vector<64x8xf32> to vector<32x8xf32>
    %c0_3 = arith.constant 0 : index
    %c0_4 = arith.constant 0 : index
    %4 = vector.load %arg3[%c0_3, %c0_4] : memref<32x1xf32, #tpu.memory_space<vmem>>, vector<32x1xf32>
    %5 = vector.broadcast %4 : vector<32x1xf32> to vector<32x8xf32>
    %6 = arith.addf %3, %5 : vector<32x8xf32>
    %cst_5 = arith.constant 0.000000e+00 : f32
    %7 = vector.broadcast %cst_5 : f32 to vector<32x8xf32>
    %8 = arith.maximumf %6, %7 : vector<32x8xf32>
    %9 = vector.extract_strided_slice %2 {offsets = [32, 0], sizes = [16, 8], strides = [1, 1]} : vector<64x8xf32> to vector<16x8xf32>
    %10 = vector.extract_strided_slice %2 {offsets = [48, 0], sizes = [16, 8], strides = [1, 1]} : vector<64x8xf32> to vector<16x8xf32>
    %c0_6 = arith.constant 0 : index
    %c0_7 = arith.constant 0 : index
    %11 = vector.load %arg4[%c0_6, %c0_7] : memref<32x32xf32, #tpu.memory_space<vmem>>, vector<32x32xf32>
    %cst_8 = arith.constant dense<0.000000e+00> : vector<32x8xf32>
    %12 = tpu.matmul %11, %8, %cst_8 {dimension_numbers = #tpu.dot_dimension_numbers<[1], [0], [0], [1], [0, 0, 1, 1], [], []>} : vector<32x32xf32>, vector<32x8xf32>, vector<32x8xf32> -> vector<32x8xf32>
    %c0_9 = arith.constant 0 : index
    %c0_10 = arith.constant 0 : index
    %13 = vector.load %arg5[%c0_9, %c0_10] : memref<32x1xf32, #tpu.memory_space<vmem>>, vector<32x1xf32>
    %14 = vector.broadcast %13 : vector<32x1xf32> to vector<32x8xf32>
    %15 = arith.addf %12, %14 : vector<32x8xf32>
    %cst_11 = arith.constant 0.000000e+00 : f32
    %16 = vector.broadcast %cst_11 : f32 to vector<32x8xf32>
    %17 = arith.maximumf %15, %16 : vector<32x8xf32>
    %c0_12 = arith.constant 0 : index
    %c0_13 = arith.constant 0 : index
    %18 = vector.load %arg6[%c0_12, %c0_13] : memref<1x32xf32, #tpu.memory_space<vmem>>, vector<1x32xf32>
    %cst_14 = arith.constant dense<0.000000e+00> : vector<1x8xf32>
    %19 = tpu.matmul %18, %17, %cst_14 {dimension_numbers = #tpu.dot_dimension_numbers<[1], [0], [0], [1], [0, 0, 1, 1], [], []>} : vector<1x32xf32>, vector<32x8xf32>, vector<1x8xf32> -> vector<1x8xf32>
    %20 = arith.mulf %9, %10 : vector<16x8xf32>
    %cst_15 = arith.constant dense<0.000000e+00> : vector<8xf32>
    %21 = vector.multi_reduction <add>, %20, %cst_15 [0] : vector<16x8xf32> to vector<8xf32>
    %22 = vector.shape_cast %21 : vector<8xf32> to vector<1x8xf32>
    %23 = arith.addf %19, %22 : vector<1x8xf32>
    %c0_16 = arith.constant 0 : index
    %c0_17 = arith.constant 0 : index
    %24 = vector.load %arg7[%c0_16, %c0_17] : memref<1x1xf32, #tpu.memory_space<vmem>>, vector<1x1xf32>
    %25 = vector.broadcast %24 : vector<1x1xf32> to vector<1x8xf32>
    %26 = arith.addf %23, %25 : vector<1x8xf32>
    %c0_18 = arith.constant 0 : index
    %c0_19 = arith.constant 0 : index
    %27 = vector.load %arg8[%c0_18, %c0_19] : memref<1x8xf32, #tpu.memory_space<vmem>>, vector<1x8xf32>
    tpu.vector_store %arg8[%c0_18, %c0_19], %26 {strides = array<i32>} : memref<1x8xf32, #tpu.memory_space<vmem>>, vector<1x8xf32>,
    return
  }
  func.func @transform_0(%arg0: i32) -> (i32, i32) {
    %c0_i32 = arith.constant 0 : i32
    %c0_i32_0 = arith.constant 0 : i32
    return %arg0, %c0_i32 : i32, i32
  }
  func.func @transform_1(%arg0: i32) -> (i32, i32) {
    %c0_i32 = arith.constant 0 : i32
    %c0_i32_0 = arith.constant 0 : i32
    %c0_i32_1 = arith.constant 0 : i32
    return %c0_i32, %c0_i32_0 : i32, i32
  }
  func.func @transform_2(%arg0: i32) -> (i32, i32) {
    %c0_i32 = arith.constant 0 : i32
    %c0_i32_0 = arith.constant 0 : i32
    %c0_i32_1 = arith.constant 0 : i32
    return %c0_i32, %c0_i32_0 : i32, i32
  }
  func.func @transform_3(%arg0: i32) -> (i32, i32) {
    %c0_i32 = arith.constant 0 : i32
    %c0_i32_0 = arith.constant 0 : i32
    %c0_i32_1 = arith.constant 0 : i32
    return %c0_i32, %c0_i32_0 : i32, i32
  }
  func.func @transform_4(%arg0: i32) -> (i32, i32) {
    %c0_i32 = arith.constant 0 : i32
    %c0_i32_0 = arith.constant 0 : i32
    %c0_i32_1 = arith.constant 0 : i32
    return %c0_i32, %c0_i32_0 : i32, i32
  }
  func.func @transform_5(%arg0: i32) -> (i32, i32) {
    %c0_i32 = arith.constant 0 : i32
    %c0_i32_0 = arith.constant 0 : i32
    %c0_i32_1 = arith.constant 0 : i32
    return %c0_i32, %c0_i32_0 : i32, i32
  }
  func.func @transform_6(%arg0: i32) -> (i32, i32) {
    %c0_i32 = arith.constant 0 : i32
    %c0_i32_0 = arith.constant 0 : i32
    %c0_i32_1 = arith.constant 0 : i32
    return %c0_i32, %c0_i32_0 : i32, i32
  }
  func.func @transform_7(%arg0: i32) -> (i32, i32) {
    %c0_i32 = arith.constant 0 : i32
    %c0_i32_0 = arith.constant 0 : i32
    return %c0_i32, %arg0 : i32, i32
  }
}

</mosaic_0001>

<bundles_post_ra>
// kernel: tpu_custom_call.1
= control target key start
LH: loop header
LB: loop body
LE: loop exit
PB: predicated region body
PF: predicated region fallthrough
CT: control target
= control target key end

     0   :  { %s454_s0 = inlined_call_operand.vmem [shape: f32[8,16], index: 0, kind: input, shape index: {}]   ;;  %s455_s1 = inlined_call_operand.vmem [shape: f32[64,16], index: 1, kind: input, shape index: {}]   ;;  %s456_s2 = inlined_call_operand.vmem [shape: f32[32,1], index: 2, kind: input, shape index: {}]   ;;  %s457_s3 = inlined_call_operand.vmem [shape: f32[32,32], index: 3, kind: input, shape index: {}]   ;;  %s458_s4 = inlined_call_operand.vmem [shape: f32[32,1], index: 4, kind: input, shape index: {}]   ;;  %s459_s5 = inlined_call_operand.vmem [shape: f32[1,32], index: 5, kind: input, shape index: {}]   ;;  %s460_s6 = inlined_call_operand.<no memory space> [shape: f32[1,1], index: 6, kind: input, shape index: {}]   ;;  %s461_s7 = inlined_call_operand.hbm [shape: f32[1,8], index: 7, kind: output, shape index: {}]  }
   0x1   :  { %v12_v0 = vstv %s460_s6 }
   0x2   :  { %13 = vst [vmem:[#allocation2] sm:$0x1] %v12_v0 }
   0x3   :  { %v37_v1 = vld [vmem:[%s454_s0] sm:$0xff]  ;;  %vm38_vm0 = vcmask 130048   ;;  %v108_v2 = vld [vmem:[%s456_s2 + $0x8] sm:$0xff]  ;;  %v325_v4 = vmov 0   ;;  %v110_v5 = vld [vmem:[%s456_s2 + $0x18] sm:$0xff] }
   0x4   :  { %275 = vmatpush.xpose.msk.msra.mxu0 %vm38_vm0, %v37_v1  ;;  %v29_v3 = vld [vmem:[%s455_s1] sm:$0xff]  ;;  %297 = vset.pattern.permute.xlu1 %v325_v4 }
   0x5   :  { %118 = vperm.xlu1 %297, %v108_v2   ;;  %296 = vset.pattern.permute.xlu0 %v325_v4 }
   0x6   :  { %128 = vperm.xlu0 %296, %v110_v5   ;;  %298 = vset.pattern.permute.xlu2 %v325_v4 }
   0x7   :  { %14 = vsyncpa [#allocation4], 0  ;;  %276 = vmatmul.msk.f32.vlgmr.msra.gmra.mxu0 %vm38_vm0, %v29_v3  ;;  %289 = vmatpush.xpose.msk.msra.mxu3 %vm38_vm0, %v37_v1  ;;  %v107_v6 = vld [vmem:[%s456_s2] sm:$0xff]  ;;  %v109_v7 = vld [vmem:[%s456_s2 + $0x10] sm:$0xff]  ;;  %vm167_vm1 = vcmask 261120   ;;  %vm216_vm2 = vcmask 64512  }
   0x8   :  { %v30_v8 = vld [vmem:[%s455_s1 + $0x8] sm:$0xff]  ;;  %v143_v9 = vld [vmem:[%s458_s4] sm:$0xff]  ;;  %v31_v11 = vld [vmem:[%s455_s1 + $0x10] sm:$0xff]  ;;  %s266_s19 = sshll.u32 %s461_s7, 4  ;;  %vm257_vm3 = vcmask 57344   ;;  %s267_s19 = int_to_ptr.hbm [resolvable:$true] %s266_s19 }
   0x9   :  { %v144_v10 = vld [vmem:[%s458_s4 + $0x8] sm:$0xff]  ;;  %v32_v12 = vld [vmem:[%s455_s1 + $0x18] sm:$0xff]  ;;  %v33_v19 = vld [vmem:[%s455_s1 + $0x20] sm:$0xff] }
   0xa   :  { %v146_v18 = vld [vmem:[%s458_s4 + $0x18] sm:$0xff]  ;;  %280 = vmatmul.msk.f32.vlgmr.msra.gmra.mxu3 %vm38_vm0, %v33_v19  ;;  %v145_v27 = vld [vmem:[%s458_s4 + $0x10] sm:$0xff]  ;;  %v34_v28 = vld [vmem:[%s455_s1 + $0x28] sm:$0xff] }
   0xb   :  { %164 = vperm.xlu2 %298, %v146_v18   ;;  %v139_v33 = vld [vmem:[%s457_s3] sm:$0xff]  ;;  %v142_v34 = vld [vmem:[%s457_s3 + $0x18] sm:$0xff]  ;;  %v35_v36 = vld [vmem:[%s455_s1 + $0x30] sm:$0xff] }
   0xc   :  { %v249_v35 = vld [vmem:[#allocation2] sm:$0x1]  ;;  %v140_v37 = vld [vmem:[%s457_s3 + $0x8] sm:$0xff]  ;;  %v36_v38 = vld [vmem:[%s455_s1 + $0x38] sm:$0xff] }
   0xd   :  { %113 = vperm.xlu1 %297, %v107_v6   ;;  %v141_v39 = vld [vmem:[%s457_s3 + $0x10] sm:$0xff]  ;;  %v213_v56 = vld [vmem:[%s459_s5] sm:$0x1]  ;;  %s326_s5 = smov [#allocation3]  }
   0xe   :  { %123 = vperm.xlu0 %296, %v109_v7   ;;  %s264_s16 = sshll.u32 %s326_s5, 4  ;;  %s265_s16 = int_to_ptr.vmem [resolvable:$true] %s264_s16 }
   0xf   :  { %277 = vmatmul.msk.f32.gmra.mxu0 %vm38_vm0, %v30_v8 }
  0x12   :  { %281 = vmatmul.msk.f32.gmra.mxu3 %vm38_vm0, %v34_v28 }
  0x13   :  { %159 = vperm.xlu2 %298, %v145_v27  }
  0x15   :  { %149 = vperm.xlu1 %297, %v143_v9  }
  0x16   :  { %154 = vperm.xlu0 %296, %v144_v10  }
  0x17   :  { %278 = vmatmul.msk.f32.gmra.mxu0 %vm38_vm0, %v31_v11 }
  0x1a   :  { %282 = vmatmul.msk.f32.gmra.mxu3 %vm38_vm0, %v35_v36 }
  0x1b   :  { %252 = vperm.xlu2 %298, %v249_v35  }
  0x1f   :  { %279 = vmatmul.msk.f32.gmra.mxu0 %vm38_vm0, %v32_v12 }
  0x22   :  { %283 = vmatmul.msk.f32.gmra.mxu3 %vm38_vm0, %v36_v38 }
  0x65   :  { %v165_v41 = vpop.permute.xlu2 %164 }
  0x6d   :  { %v160_v47 = vpop.permute.xlu2 %159 }
  0x75   :  { %v253_v7 = vpop.permute.xlu2 %252 }
  0x76   :  { %v255_v10 = vperm.slane %v253_v7, 0 }
  0x77   :  { %v119_v16 = vpop.permute.xlu1 %118 }
  0x78   :  { %v129_v15 = vpop.permute.xlu0 %128 }
  0x7f   :  { %v114_v24 = vpop.permute.xlu1 %113 }
  0x80   :  { %v124_v20 = vpop.permute.xlu0 %123 }
  0x84   :  { %v83_v13 = vpop.f32.mrf.mxu0 }
  0x85   :  { %v131_v29 = vadd.f32 %v114_v24, %v83_v13 }
  0x87   :  { %v135_v32 = vmax.f32 %v131_v29, 0.0  ;;  %v150_v51 = vpop.permute.xlu1 %149 }
  0x88   :  { %v155_v46 = vpop.permute.xlu0 %154 }
  0x8c   :  { %v86_v14 = vpop.f32.mrf.mxu0 }
  0x8d   :  { %v132_v25 = vadd.f32 %v119_v16, %v86_v14  ;;  %v95_v57 = vpop.f32.mrf.mxu3 }
  0x8f   :  { %v136_v31 = vmax.f32 %v132_v25, 0.0 }
  0x94   :  { %v89_v17 = vpop.f32.mrf.mxu0 }
  0x95   :  { %v133_v22 = vadd.f32 %v124_v20, %v89_v17  ;;  %v98_v58 = vpop.f32.mrf.mxu3 }
  0x97   :  { %v137_v30 = vmax.f32 %v133_v22, 0.0 }
  0x9c   :  { %v92_v21 = vpop.f32.mrf.mxu0 }
  0x9d   :  { %v134_v23 = vadd.f32 %v129_v15, %v92_v21  ;;  %v101_v59 = vpop.f32.mrf.mxu3 }
  0x9e   :  { %v214_v61 = vmul.f32 %v101_v59, %v95_v57 }
  0x9f   :  { %v138_v26 = vmax.f32 %v134_v23, 0.0 }
  0xa0   :  { %v217_v63 = vsel %vm216_vm2, %v214_v61, 0.0 }
  0xa1   :  { %192 = vmatpush.msra.mxu1 %v138_v26  ;;  %290 = vmatpush.msra.mxu2 %v138_v26 }
  0xa3   :  { %193 = vmatpush.msra.mxu1 %v137_v30  ;;  %291 = vmatpush.msra.mxu2 %v137_v30 }
  0xa5   :  { %194 = vmatpush.msra.mxu1 %v136_v31  ;;  %292 = vmatpush.msra.mxu2 %v136_v31  ;;  %v104_v60 = vpop.f32.mrf.mxu3 }
  0xa6   :  { %v215_v62 = vmul.f32 %v104_v60, %v98_v58 }
  0xa7   :  { %195 = vmatpush.msra.mxu1 %v135_v32  ;;  %293 = vmatpush.msra.mxu2 %v135_v32 }
  0xa8   :  { %284 = vmatmul.msk.f32.vlgmr.msra.gmra.mxu1 %vm167_vm1, %v139_v33  ;;  %287 = vmatmul.msk.f32.vlgmr.msra.gmra.mxu2 %vm167_vm1, %v142_v34  ;;  %v218_v0 = vsel %vm216_vm2, %v215_v62, 0.0 }
  0xa9   :  { %v219_v1 = vadd.f32 %v218_v0, %v217_v63 }
  0xab   :  { %v220_v2 = vrot.slane %v219_v1, 4 }
  0xad   :  { %v221_v3 = vadd.f32 %v220_v2, %v219_v1 }
  0xaf   :  { %v222_v4 = vrot.slane %v221_v3, 2 }
  0xb0   :  { %285 = vmatmul.msk.f32.gmra.mxu1 %vm167_vm1, %v140_v37 }
  0xb1   :  { %v223_v5 = vadd.f32 %v222_v4, %v221_v3 }
  0xb3   :  { %v224_v6 = vrot.slane %v223_v5, 1 }
  0xb5   :  { %v225_v8 = vadd.f32 %v224_v6, %v223_v5 }
  0xb8   :  { %286 = vmatmul.msk.f32.gmra.mxu1 %vm167_vm1, %v141_v39 }
 0x125   :  { %v197_v40 = vpop.f32.mrf.mxu1 }
 0x126   :  { %v198_v52 = vadd.f32 %v197_v40, %v150_v51 }
 0x128   :  { %v209_v55 = vmax.f32 %v198_v52, 0.0 }
 0x12b   :  { %v206_v42 = vpop.f32.mrf.mxu2 }
 0x12c   :  { %v207_v43 = vadd.f32 %v206_v42, %v165_v41 }
 0x12d   :  { %v200_v44 = vpop.f32.mrf.mxu1 }
 0x12e   :  { %v212_v45 = vmax.f32 %v207_v43, 0.0  ;;  %v201_v49 = vadd.f32 %v200_v44, %v155_v46 }
 0x130   :  { %241 = vmatpush.msrb.mxu2 %v212_v45  ;;  %v210_v54 = vmax.f32 %v201_v49, 0.0 }
 0x135   :  { %v203_v48 = vpop.f32.mrf.mxu1 }
 0x136   :  { %v204_v50 = vadd.f32 %v203_v48, %v160_v47 }
 0x138   :  { %v211_v53 = vmax.f32 %v204_v50, 0.0 }
 0x13a   :  { %242 = vmatpush.msrb.mxu2 %v211_v53 }
 0x13c   :  { %243 = vmatpush.msrb.mxu2 %v210_v54 }
 0x13e   :  { %244 = vmatpush.msrb.mxu2 %v209_v55 }
 0x13f   :  { %288 = vmatmul.msk.f32.vlgmr.msrb.gmra.mxu2 %vm167_vm1, %v213_v56 }
 0x1c2   :  { %v246_v9 = vpop.f32.mrf.mxu2 }
 0x1c3   :  { %v247_v11 = vadd.f32 %v246_v9, %v225_v8 }
 0x1c5   :  { %v256_v12 = vadd.f32 %v255_v10, %v247_v11 }
 0x1c7   :  { %258 = vst.msk [vmem:[#allocation3] sm:$0x1] %vm257_vm3, %v256_v12 }
 0x1c8   :  { %269 = dma.vmem_to_hbm [thread:$0]  %s265_s16, 16, %s267_s19, [#allocation4]  }
 0x1c9   :  { %323 = dma.done.wait [#allocation4], 16  }
 0x1ca   :  { %324 = vsyncadd [#allocation4], 4294967280 }
 0x1cb   :  { %274 = vsyncpa [#allocation4], 1 }

</bundles_post_ra>
